<compile_context>
chip_gen: v7x
topology: tpu7x:2x2x1
jax: 0.10.0
libtpu: 0.0.40
codegen_flags: <defaults>
</compile_context>

<pallas_src>
import math
from functools import partial

import jax
import jax.numpy as jnp
from jax.experimental import pallas as pl
from jax.experimental.pallas import tpu as pltpu


# ----------------------------------------------------------------------------
# Pad arithmetic (mirrors SamePad2d.forward exactly)
# ----------------------------------------------------------------------------
def _pair(v):
    return (v, v) if isinstance(v, int) else tuple(v)


def same_pad_amounts(in_size2, in_size3, kernel_size, stride):
    """(pad_left, pad_right, pad_top, pad_bottom) exactly as the PyTorch
    SamePad2d module computes them.

    in_size2 = input.size()[2]  (the module calls this 'in_width')
    in_size3 = input.size()[3]  (the module calls this 'in_height')
    (left,right) is applied to dim -1, (top,bottom) to dim -2 by F.pad.
    """
    kw, kh = _pair(kernel_size)
    sw, sh = _pair(stride)
    out_w = math.ceil(float(in_size2) / float(sw))
    out_h = math.ceil(float(in_size3) / float(sh))
    pad_along_width = (out_w - 1) * sw + kw - in_size2
    pad_along_height = (out_h - 1) * sh + kh - in_size3
    pad_left = math.floor(pad_along_width / 2)
    pad_top = math.floor(pad_along_height / 2)
    pad_right = pad_along_width - pad_left
    pad_bottom = pad_along_height - pad_top
    return pad_left, pad_right, pad_top, pad_bottom


# ----------------------------------------------------------------------------
# Pallas kernel: single-write — zero only the border strips, store the
# interior exactly once.  All pad amounts are static Python ints, so the
# zero-size strips are elided at trace time.
# ----------------------------------------------------------------------------
def _samepad_kernel(x_ref, o_ref, *, pad_top, pad_bottom, pad_left, pad_right,
                    h, w):
    rb, hp, wp = o_ref.shape
    if pad_top:
        o_ref[:, :pad_top, :] = jnp.zeros((rb, pad_top, wp), o_ref.dtype)
    if pad_bottom:
        o_ref[:, pad_top + h:, :] = jnp.zeros((rb, pad_bottom, wp), o_ref.dtype)
    if pad_left:
        o_ref[:, pad_top:pad_top + h, :pad_left] = jnp.zeros(
            (rb, h, pad_left), o_ref.dtype)
    if pad_right:
        o_ref[:, pad_top:pad_top + h, pad_left + w:] = jnp.zeros(
            (rb, h, pad_right), o_ref.dtype)
    # Interior: stored exactly once (never pre-zeroed).
    o_ref[:, pad_top:pad_top + h, pad_left:pad_left + w] = x_ref[...]


# ----------------------------------------------------------------------------
# Wrapper
# ----------------------------------------------------------------------------
def same_pad_2d(x, kernel_size, stride):
    """SamePad2d.forward for an NCHW tensor, via a single Pallas kernel."""
    n, c, h, w = x.shape
    pad_left, pad_right, pad_top, pad_bottom = same_pad_amounts(
        h, w, kernel_size, stride
    )

    # F.pad semantics: negative padding crops that side.  Handle the crop
    # statically in the wrapper so the kernel only ever adds zeros.
    crop_t, crop_b = max(0, -pad_top), max(0, -pad_bottom)
    crop_l, crop_r = max(0, -pad_left), max(0, -pad_right)
    if crop_t or crop_b or crop_l or crop_r:
        x = x[:, :, crop_t:h - crop_b, crop_l:w - crop_r]
        n, c, h, w = x.shape
    pad_top, pad_bottom = max(0, pad_top), max(0, pad_bottom)
    pad_left, pad_right = max(0, pad_left), max(0, pad_right)

    hp = h + pad_top + pad_bottom
    wp = w + pad_left + pad_right

    # Flatten (N, C) into one grid axis: every (n, c) slab is independent.
    rows = n * c
    itemsize = x.dtype.itemsize
    bytes_per_row = (h * w + hp * wp) * itemsize  # one input + one output slab

    # Generation-aware VMEM budget.  vmem_limit is the scoped limit we request;
    # the working-set budget (double-buffered in+out slabs) stays at half of it.
    try:
        vmem_cap = int(pltpu.get_tpu_info().vmem_capacity_bytes)
    except Exception:
        vmem_cap = 64 << 20  # conservative (v7x per-TensorCore VMEM)
    vmem_limit = min(64 << 20, (3 * vmem_cap) // 4)  # 64 MiB v5e/v6e, 48 MiB v7x
    budget = vmem_limit // 2

    if 2 * bytes_per_row > budget:
        # TODO(synk): add an H-tiled Pallas path (pad_top-aware manual DMA
        # offsets) for very large feature maps instead of falling back to XLA.
        return jnp.pad(
            x, ((0, 0), (0, 0), (pad_top, pad_bottom), (pad_left, pad_right))
        )

    # cdiv-based blocking: largest slab that fits the budget, but keep >=4
    # grid steps when rows allow (v7x dual-TC sharding + DMA/compute overlap;
    # >=2 steps on small inputs for pipelining).
    rows_per_block = max(1, budget // (2 * bytes_per_row))
    if rows >= 4:
        target_steps = 4
    elif rows >= 2:
        target_steps = 2
    else:
        target_steps = 1
    rows_per_block = min(rows_per_block, max(1, pl.cdiv(rows, target_steps)), rows)
    grid = (pl.cdiv(rows, rows_per_block),)

    x3 = x.reshape(rows, h, w)
    kernel = partial(
        _samepad_kernel,
        pad_top=pad_top, pad_bottom=pad_bottom,
        pad_left=pad_left, pad_right=pad_right,
        h=h, w=w,
    )
    out = pl.pallas_call(
        kernel,
        out_shape=jax.ShapeDtypeStruct((rows, hp, wp), x.dtype),
        grid_spec=pl.GridSpec(
            grid=grid,
            in_specs=[pl.BlockSpec((rows_per_block, h, w), lambda i: (i, 0, 0))],
            out_specs=pl.BlockSpec((rows_per_block, hp, wp), lambda i: (i, 0, 0)),
        ),
        compiler_params=pltpu.CompilerParams(
            # Each grid step writes a distinct output slab -> parallel is safe
            # and lets v7x shard steps across its two TensorCores.
            dimension_semantics=("parallel",),
            vmem_limit_bytes=vmem_limit,
        ),
    )(x3)
    return out.reshape(n, c, hp, wp)


# ----------------------------------------------------------------------------
# Reference (pure JAX) for correctness checking
# ----------------------------------------------------------------------------
def same_pad_2d_ref(x, kernel_size, stride):
    n, c, h, w = x.shape
    pad_left, pad_right, pad_top, pad_bottom = same_pad_amounts(
        h, w, kernel_size, stride
    )
    return jnp.pad(
        x, ((0, 0), (0, 0), (pad_top, pad_bottom), (pad_left, pad_right))
    )


if __name__ == "__main__":
    key = jax.random.PRNGKey(0)
    k1, k2, k3 = jax.random.split(key, 3)

    # Case 1: square input, odd kernel, stride 1 -> symmetric pad (1,1,1,1)
    x = jax.random.normal(k1, (2, 4, 16, 16), dtype=jnp.float32)
    f1 = jax.jit(partial(same_pad_2d, kernel_size=3, stride=1))
    out1 = jax.block_until_ready(f1(x))
    ref1 = same_pad_2d_ref(x, 3, 1)
    assert out1.shape == ref1.shape, (out1.shape, ref1.shape)
    assert bool(jnp.allclose(out1, ref1))

    # Case 2: odd kernel, stride 2 -> asymmetric floor/ceil split
    f2 = jax.jit(partial(same_pad_2d, kernel_size=7, stride=2))
    out2 = jax.block_until_ready(f2(x))
    ref2 = same_pad_2d_ref(x, 7, 2)
    assert out2.shape == ref2.shape, (out2.shape, ref2.shape)
    assert bool(jnp.allclose(out2, ref2))

    # Case 3: non-square input + non-square kernel (exercises the module's
    # size()[2]/size()[3] naming quirk exactly as PyTorch would apply it)
    y = jax.random.normal(k2, (2, 4, 16, 12), dtype=jnp.float32)
    f3 = jax.jit(partial(same_pad_2d, kernel_size=(5, 3), stride=(1, 1)))
    out3 = jax.block_until_ready(f3(y))
    ref3 = same_pad_2d_ref(y, (5, 3), (1, 1))
    assert out3.shape == ref3.shape, (out3.shape, ref3.shape)
    assert bool(jnp.allclose(out3, ref3))

    # Case 4: rows = N*C = 3 (no nice divisor) -> exercises cdiv blocking with
    # a partial leading-dim block.
    z = jax.random.normal(k3, (1, 3, 16, 16), dtype=jnp.float32)
    f4 = jax.jit(partial(same_pad_2d, kernel_size=3, stride=1))
    out4 = jax.block_until_ready(f4(z))
    ref4 = same_pad_2d_ref(z, 3, 1)
    assert out4.shape == ref4.shape, (out4.shape, ref4.shape)
    assert bool(jnp.allclose(out4, ref4))

    assert bool(jnp.all(jnp.isfinite(out1)))
    print("KERNEL_OK")
</pallas_src>

<mosaic_0001>
module attributes {stable_mosaic.version = 11 : i64} {
  func.func @_samepad_kernel(%arg0: i32, %arg1: memref<2x16x16xf32, #tpu.memory_space<vmem>>, %arg2: memref<2x18x18xf32, #tpu.memory_space<vmem>>) attributes {dimension_semantics = [#tpu.dimension_semantics<parallel>], iteration_bounds = array<i64: 4>, scalar_prefetch = 0 : i64, scratch_operands = 0 : i64, tpu.core_type = #tpu.core_type<tc>, window_params = [{transform_indices = @transform_0, window_bounds = array<i64: 2, 16, 16>}, {transform_indices = @transform_1, window_bounds = array<i64: 2, 18, 18>}]} {
    %cst = arith.constant 0.000000e+00 : f32
    %0 = vector.broadcast %cst : f32 to vector<2x1x18xf32>
    %c0 = arith.constant 0 : index
    %c0_0 = arith.constant 0 : index
    %c0_1 = arith.constant 0 : index
    %1 = vector.load %arg2[%c0, %c0_0, %c0_1] : memref<2x18x18xf32, #tpu.memory_space<vmem>>, vector<2x1x18xf32>
    tpu.vector_store %arg2[%c0, %c0_0, %c0_1], %0 {strides = array<i32>} : memref<2x18x18xf32, #tpu.memory_space<vmem>>, vector<2x1x18xf32>,
    %cst_2 = arith.constant 0.000000e+00 : f32
    %2 = vector.broadcast %cst_2 : f32 to vector<2x1x18xf32>
    %c0_3 = arith.constant 0 : index
    %c17 = arith.constant 17 : index
    %c0_4 = arith.constant 0 : index
    %3 = vector.load %arg2[%c0_3, %c17, %c0_4] : memref<2x18x18xf32, #tpu.memory_space<vmem>>, vector<2x1x18xf32>
    tpu.vector_store %arg2[%c0_3, %c17, %c0_4], %2 {strides = array<i32>} : memref<2x18x18xf32, #tpu.memory_space<vmem>>, vector<2x1x18xf32>,
    %cst_5 = arith.constant 0.000000e+00 : f32
    %4 = vector.broadcast %cst_5 : f32 to vector<2x16x1xf32>
    %c0_6 = arith.constant 0 : index
    %c1 = arith.constant 1 : index
    %c0_7 = arith.constant 0 : index
    %5 = vector.load %arg2[%c0_6, %c1, %c0_7] : memref<2x18x18xf32, #tpu.memory_space<vmem>>, vector<2x16x1xf32>
    tpu.vector_store %arg2[%c0_6, %c1, %c0_7], %4 {strides = array<i32>} : memref<2x18x18xf32, #tpu.memory_space<vmem>>, vector<2x16x1xf32>,
    %cst_8 = arith.constant 0.000000e+00 : f32
    %6 = vector.broadcast %cst_8 : f32 to vector<2x16x1xf32>
    %c0_9 = arith.constant 0 : index
    %c1_10 = arith.constant 1 : index
    %c17_11 = arith.constant 17 : index
    %7 = vector.load %arg2[%c0_9, %c1_10, %c17_11] : memref<2x18x18xf32, #tpu.memory_space<vmem>>, vector<2x16x1xf32>
    tpu.vector_store %arg2[%c0_9, %c1_10, %c17_11], %6 {strides = array<i32>} : memref<2x18x18xf32, #tpu.memory_space<vmem>>, vector<2x16x1xf32>,
    %c0_12 = arith.constant 0 : index
    %c0_13 = arith.constant 0 : index
    %c0_14 = arith.constant 0 : index
    %8 = vector.load %arg1[%c0_12, %c0_13, %c0_14] : memref<2x16x16xf32, #tpu.memory_space<vmem>>, vector<2x16x16xf32>
    %c0_15 = arith.constant 0 : index
    %c1_16 = arith.constant 1 : index
    %c1_17 = arith.constant 1 : index
    %9 = vector.load %arg2[%c0_15, %c1_16, %c1_17] : memref<2x18x18xf32, #tpu.memory_space<vmem>>, vector<2x16x16xf32>
    tpu.vector_store %arg2[%c0_15, %c1_16, %c1_17], %8 {strides = array<i32>} : memref<2x18x18xf32, #tpu.memory_space<vmem>>, vector<2x16x16xf32>,
    return
  }
  func.func @transform_0(%arg0: i32) -> (i32, i32, i32) {
    %c0_i32 = arith.constant 0 : i32
    %c0_i32_0 = arith.constant 0 : i32
    %c0_i32_1 = arith.constant 0 : i32
    return %arg0, %c0_i32, %c0_i32_0 : i32, i32, i32
  }
  func.func @transform_1(%arg0: i32) -> (i32, i32, i32) {
    %c0_i32 = arith.constant 0 : i32
    %c0_i32_0 = arith.constant 0 : i32
    %c0_i32_1 = arith.constant 0 : i32
    return %arg0, %c0_i32, %c0_i32_0 : i32, i32, i32
  }
}

</mosaic_0001>

<bundles_post_ra>
// kernel: same_pad_2d.1
= control target key start
LH: loop header
LB: loop body
LE: loop exit
PB: predicated region body
PF: predicated region fallthrough
CT: control target
= control target key end

     0   :  { %6 = vsyncpa [#allocation3], 0  ;;  %s511_s0 = inlined_call_operand.hbm [shape: f32[8,16,16], index: 0, kind: input, shape index: {}]   ;;  %s512_s1 = inlined_call_operand.vmem [shape: f32[8,18,18], index: 1, kind: output, shape index: {}]  }
   0x1   :  { %8 = vsyncpa [#allocation3 + $0x1], 0  ;;  %s392_s6 = smov 0   ;;  %s394_s7 = smov 0  }
   0x2   :  { %s396_s8 = smov 0   ;;  %s398_s9 = smov 0  }
   0x3 LB: > { %s251_s10 = sadd.s32 4294967295, %s375_s9   ;;  %s412_s11 = sadd.s32 1, %s375_s9   ;;  %s375_s9 = sphi %s398_s9, %s519_s9   ;;  %s371_s8 = sphi %s396_s8, %s518_s8   ;;  %s367_s7 = sphi %s394_s7, %s517_s7   ;;  %s363_s6 = sphi %s392_s6, %s516_s6  }
   0x4   : > { %s18_s12 = ssub.s32 %s375_s9, %s412_s11  ;;  %s21_s13 = sadd.s32 1, %s371_s8 }
   0x5   : > { %p19_p0 = scmp.eq.s32.totalorder %s18_s12, 0  ;;  %p28_p1 = scmp.ne.s32.totalorder %s371_s8, %s367_s7 }
   0x6   : > { %p29_p2 = scmp.eq.s32.totalorder %s375_s9, 0  ;;  %p34_p3 = scmp.ne.s32.totalorder %s367_s7, %s363_s6 }
   0x7   : > { %s422_s14 = scalar_select %p19_p0, %s371_s8, %s21_s13  }
   0x8   : > { %p30_p4 = por %p29_p2, %p28_p1  ;;  %p35_p5 = scmp.eq.s32.totalorder %s251_s10, 0 }
   0x9   : > { %p274_p6 = scmp.lt.s32.totalorder %s375_s9, 4  ;;  %s84_s16 = sand.u32 1, %s371_s8  }
   0xa   : > { %p427_p7 = por %p35_p5, %p34_p3  ;;  %s255_s17 = sshll.u32 %s84_s16, 5 }
   0xb   : > { %s266_s18 = sshll.u32 %s375_s9, 9  ;;  %s88_s22 = scalar_lea.vmem [#allocation2], %s255_s17 }
   0xc   : > { %s436_s21 = scalar_lea.hbm %s511_s0, %s266_s18  ;;  %s96_s23 = sshll.u32 %s88_s22, 4  ;;  %s438_s23 = int_to_ptr.vmem [resolvable:$true] %s96_s23 }
   0xd   : > { %p440_p8 = pnand %p274_p6, %p30_p4  ;;  %s445_s25 = scalar_lea.sflag [#allocation3], %s84_s16 }
   0xe   : > { %s311_s26 = scalar_lea.hbm %s436_s21, 512  ;;  %s316_s29 = scalar_lea.hbm %s511_s0, 2048 }
   0xf   : > { %p312_p10 = scmp.ne.s32.totalorder %s436_s21, %s311_s26  ;;  %p313_p11 = pneg %p440_p8 }
  0x10   : > { %p317_p0 = scmp.lt.u32.totalorder %s436_s21, %s511_s0  ;;  %p318_p1 = scmp.lt.u32.totalorder %s316_s29, %s311_s26 }
  0x11   : > { %p314_p12 = pnand %p313_p11, %p312_p10  ;;  %p320_p3 = scmp.lt.u32.totalorder %s311_s26, %s436_s21 }
  0x12   : > { %p319_p2 = por %p318_p1, %p317_p0 }
  0x13   : > { %p315_p13 = pneg %p314_p12 }
  0x14   : > { %p321_p4 = por %p320_p3, %p319_p2 }
  0x16   : > { %p322_p5 = pnand %p321_p4, %p315_p13 }
  0x18   : > { %325 = shalt.err (!%p322_p5)
}
  0x19   : > { %s326_s3 = scalar_lea.vmem %s438_s23, 512  ;;  %s377_s4 = smov [#allocation2]  }
  0x1a   : > { %p327_p6 = scmp.ne.s32.totalorder %s438_s23, %s326_s3  ;;  %s331_s5 = sshll.u32 %s377_s4, 4  ;;  %s332_s5 = int_to_ptr.vmem [resolvable:$false] %s331_s5 }
  0x1b   : > { %s333_s6 = scalar_lea.vmem %s332_s5, 1024  ;;  %p334_p9 = scmp.lt.s32.totalorder %s438_s23, %s332_s5 }
  0x1c   : > { %p329_p10 = pnand %p327_p6, %p313_p11  ;;  %p335_p0 = scmp.lt.s32.totalorder %s333_s6, %s326_s3 }
  0x1e   : > { %p330_p12 = pneg %p329_p10  ;;  %p336_p1 = por %p335_p0, %p334_p9 }
  0x20   : > { %p337_p2 = pnand %p336_p1, %p330_p12 }
  0x22   : > { %340 = shalt.err (!%p337_p2)
}
  0x23   : > { %s378_s12 = smov 128   ;;  %s379_s13 = smov 8  }
  0x24   : > { %273 = dma.hbm_to_vmem [thread:$0]  (!%p440_p8), %s436_s21, 512, %s438_s23, %s445_s25, %s378_s12, %s378_s12, %s379_s13  }
  0x25   : > { %p104_p11 = scmp.lt.s32.totalorder %s375_s9, 5  ;;  %p515_p13 = scmp.ge.s32.totalorder %s375_s9, 1 }
  0x27   : > { %p105_p3 = pnand %p515_p13, %p104_p11 }
  0x28   : > { %s110_s16 = sand.u32 (!%p105_p3), 1, %s367_s7  }
  0x29   : > { %108 = sbr.rel (%p105_p3) target bundleno = 171 (0xab), region = 24  ;;  %s260_s17 = sshll.u32 (!%p105_p3), %s110_s16, 5 }
  0x2a   : > { %s111_s18 = scalar_lea.sflag (!%p105_p3), [#allocation3], %s110_s16  ;;  %s114_s19 = scalar_lea.vmem (!%p105_p3), [#allocation2], %s260_s17 }
  0x30   : > { %358 = dma.done.wait (%p427_p7), %s111_s18, 512  }
  0x31   : > { %360 = vsyncadd (%p427_p7), %s111_s18, 4294966784  ;;  %s261_s20 = sshll.u32 %s251_s10, 1  ;;  %vm142_vm0 = vcmask 139264   ;;  %vm147_vm1 = vcmask 7168   ;;  %v157_v0 = vld [vmem:[%s114_s19] sm:$0xff]  ;;  %v159_v1 = vld [vmem:[%s114_s19 + $0x10] sm:$0xff] }
  0x32   : > { %p136_p9 = scmp.lt.s32.totalorder %s261_s20, 7  ;;  %vm152_vm2 = vcmask 146568   ;;  %s380_s25 = smov 1   ;;  %v381_v2 = vmov 0.0   ;;  %v158_v3 = vld [vmem:[%s114_s19 + $0x8] sm:$0xff]  ;;  %v160_v4 = vld [vmem:[%s114_s19 + $0x18] sm:$0xff] }
  0x33   : > { %165 = vrot.lane.b32.xlu0 %v157_v0, %s380_s25  ;;  %169 = vrot.lane.b32.xlu1 %v159_v1, %s380_s25  ;;  %vm177_vm3 = vcmask 138248  }
  0x34   : > { %s521_s20 = smov (!%p136_p9, %s261_s20), 7 }
  0x35   : > { %s267_s21 = smul.u32 24, %s521_s20 }
  0x37   : > { %s140_s24 = scalar_lea.vmem %s512_s1, %s267_s21  ;;  %167 = vrot.lane.b32.xlu0 %v158_v3, %s380_s25  ;;  %171 = vrot.lane.b32.xlu1 %v160_v4, %s380_s25 }
  0x38   : > { %143 = vst.msk [vmem:[%s140_s24] sm:$0x1] %vm142_vm0, %v381_v2  ;;  %145 = vst.msk [vmem:[%s140_s24 + $0x11] sm:$0x1] %vm142_vm0, %v381_v2 }
  0x39   : > { %148 = vst.msk [vmem:[%s140_s24 + $0x1] sm:$0xff] %vm147_vm1, %v381_v2  ;;  %149 = vst.msk [vmem:[%s140_s24 + $0x9] sm:$0xff] %vm147_vm1, %v381_v2 }
  0x3a   : > { %144 = vst.msk [vmem:[%s140_s24 + $0x18] sm:$0x1] %vm142_vm0, %v381_v2  ;;  %146 = vst.msk [vmem:[%s140_s24 + $0x29] sm:$0x1] %vm142_vm0, %v381_v2 }
  0x3b   : > { %150 = vst.msk [vmem:[%s140_s24 + $0x19] sm:$0xff] %vm147_vm1, %v381_v2  ;;  %151 = vst.msk [vmem:[%s140_s24 + $0x21] sm:$0xff] %vm147_vm1, %v381_v2 }
  0x3c   : > { %153 = vst.msk [vmem:[%s140_s24 + $0x1] sm:$0xff] %vm152_vm2, %v381_v2  ;;  %154 = vst.msk [vmem:[%s140_s24 + $0x9] sm:$0xff] %vm152_vm2, %v381_v2 }
  0x3d   : > { %155 = vst.msk [vmem:[%s140_s24 + $0x19] sm:$0xff] %vm152_vm2, %v381_v2  ;;  %156 = vst.msk [vmem:[%s140_s24 + $0x21] sm:$0xff] %vm152_vm2, %v381_v2 }
  0xa5   : > { %v166_v5 = vpop.permute.xlu0 %165  ;;  %v170_v6 = vpop.permute.xlu1 %169 }
  0xa6   : > { %178 = vst.msk [vmem:[%s140_s24 + $0x1] sm:$0xff] %vm177_vm3, %v166_v5  ;;  %180 = vst.msk [vmem:[%s140_s24 + $0x19] sm:$0xff] %vm177_vm3, %v170_v6 }
  0xa9   : > { %v168_v7 = vpop.permute.xlu0 %167  ;;  %v172_v8 = vpop.permute.xlu1 %171 }
  0xaa   : > { %179 = vst.msk [vmem:[%s140_s24 + $0x9] sm:$0xff] %vm177_vm3, %v168_v7  ;;  %181 = vst.msk [vmem:[%s140_s24 + $0x21] sm:$0xff] %vm177_vm3, %v172_v8 }
  0xab PF: > { %p11_p7 = scmp.ge.s32.totalorder %s412_s11, 6   ;;  %s516_s6 = smov %s367_s7 }
  0xac   : > { %s517_s7 = smov %s371_s8  ;;  %s518_s8 = smov %s422_s14 }
  0xad   : > { %s519_s9 = smov %s412_s11  ;;  %13 = sbr.rel (!%p11_p7) target bundleno = 3 (0x3), region = 64 }
  0xb4   :  { %206 = vsyncpa [#allocation3], 1 }
  0xb5   :  { %208 = vsyncpa [#allocation3 + $0x1], 1 }

</bundles_post_ra>
